<compile_context>
chip_gen: v5e
topology: v5e:2x2
jax: 0.10.0
libtpu: 0.0.40
codegen_flags: <defaults>
</compile_context>

<pallas_src>
import math

import jax
import jax.numpy as jnp
from jax.experimental import pallas as pl
from jax.experimental.pallas import tpu as pltpu


def feature_regression_kernel(x_ref, w_ref, b_ref, o_ref):
    # x_ref: (tb, F) VMEM batch tile
    # w_ref: (O, F) VMEM, pre-masked (W * m), resident across the grid
    # b_ref: (O, 1) VMEM, resident tiny bias block
    # o_ref: (O, tb) — lane axis is the batch => unmasked, lane-dense stores.
    zw = jax.lax.dot_general(
        w_ref[...],
        x_ref[...],
        dimension_numbers=(((1,), (1,)), ((), ())),   # contract feature dims
        preferred_element_type=jnp.float32,
    )  # (O, tb), f32 accumulate on the MXU
    o_ref[...] = (zw + b_ref[...]).astype(o_ref.dtype)  # single broadcast vadd


def _pick_batch_tile(B, F, itemsize):
    """Lane-dense batch tile that fits comfortably in scoped VMEM."""
    lanes_per_row = pl.cdiv(F, 128) * 128            # x rows are lane-padded
    bytes_per_row = 2 * lanes_per_row * itemsize     # x is double-buffered
    vmem_budget = 8 << 20                            # << v5e's 16 MiB scoped default
    cap = max(128, (vmem_budget // bytes_per_row) // 128 * 128)

    if B <= 256:
        # Launch overhead dominates; one block (block dim == full array
        # extent) is the cheapest legal configuration.
        return B

    tb = min(2048, cap)
    # Shrink until there are >= 2 grid steps so v7x's two TensorCores both
    # stream this mem-bound op (tiles stay multiples of 128 => lane-dense).
    while tb > 128 and B <= tb:
        tb //= 2
    return tb


def feature_regression(x, Wm, b, *, tb=None):
    """x: (B, F); Wm: (O, F) pre-masked weights (W * m); b: (O,).

    Returns (B, O) == x @ Wm.T + b  (same as F.linear(x, W*m, b)).
    """
    B, F = x.shape
    O, Fw = Wm.shape
    assert Fw == F, "weight / input feature mismatch"
    assert b.shape == (O,)

    if tb is None:
        tb = _pick_batch_tile(B, F, x.dtype.itemsize)
    nb = pl.cdiv(B, tb)  # partial last block is handled by Pallas (OOB writes dropped)

    b2d = b.reshape(O, 1).astype(jnp.float32)

    out_t = pl.pallas_call(
        feature_regression_kernel,
        out_shape=jax.ShapeDtypeStruct((O, B), x.dtype),
        grid=(nb,),
        in_specs=[
            pl.BlockSpec((tb, F), lambda i: (i, 0)),   # x batch tile (VMEM)
            pl.BlockSpec((O, F), lambda i: (0, 0)),    # masked W, resident (VMEM)
            pl.BlockSpec((O, 1), lambda i: (0, 0)),    # bias, resident tiny block
        ],
        out_specs=pl.BlockSpec((O, tb), lambda i: (0, i)),
        compiler_params=pltpu.CompilerParams(
            dimension_semantics=("parallel",),
        ),
    )(x, Wm, b2d)

    # Layout plumbing only: kernel emits a lane-dense (O, B) slab; the module
    # contract is (B, O).
    return out_t.T


if __name__ == "__main__":
    input_size = 33
    batch = 8

    key = jax.random.PRNGKey(0)
    k_w, k_b, k_x, k_x2 = jax.random.split(key, 4)

    # Deterministic parameter init matching reset_parameters():
    # stdv = 1 / sqrt(W.size(0)) = 1 / sqrt(2), uniform(-stdv, stdv).
    stdv = 1.0 / math.sqrt(2.0)
    W = jax.random.uniform(k_w, (2, input_size), jnp.float32, -stdv, stdv)
    b = jax.random.uniform(k_b, (2,), jnp.float32, -stdv, stdv)

    # Buffer m: ones with m[0,0] = m[1,1] = 0 (constant diagonal mask).
    m = jnp.ones((2, input_size), jnp.float32)
    m = m.at[0, 0].set(0.0).at[1, 1].set(0.0)

    # Fold the constant mask into the weights ONCE at "model load" time —
    # the kernel never sees m.
    Wm = W * m  # (O, F)

    # --- demo-size check (single block path) ---
    x = jax.random.normal(k_x, (batch, input_size), jnp.float32)
    out = feature_regression(x, Wm, b)
    out = jax.block_until_ready(out)
    ref = x @ Wm.T + b
    assert out.shape == (batch, 2)
    assert jnp.allclose(out, ref, atol=1e-5, rtol=1e-5)

    # --- tiled path check (nb >= 2, lane-dense 128-multiple batch tiles) ---
    x2 = jax.random.normal(k_x2, (512, input_size), jnp.float32)
    out2 = feature_regression(x2, Wm, b)
    out2 = jax.block_until_ready(out2)
    ref2 = x2 @ Wm.T + b
    assert out2.shape == (512, 2)
    assert jnp.allclose(out2, ref2, atol=1e-5, rtol=1e-5)

    print("KERNEL_OK")
</pallas_src>

<mosaic_0001>
module attributes {stable_mosaic.version = 11 : i64} {
  func.func @feature_regression_kernel(%arg0: i32, %arg1: memref<8x33xf32, #tpu.memory_space<vmem>>, %arg2: memref<2x33xf32, #tpu.memory_space<vmem>>, %arg3: memref<2x1xf32, #tpu.memory_space<vmem>>, %arg4: memref<2x8xf32, #tpu.memory_space<vmem>>) attributes {dimension_semantics = [#tpu.dimension_semantics<parallel>], iteration_bounds = array<i64: 1>, scalar_prefetch = 0 : i64, scratch_operands = 0 : i64, tpu.core_type = #tpu.core_type<tc>, window_params = [{transform_indices = @transform_0, window_bounds = array<i64: 8, 33>}, {pipeline_mode = #tpu.pipeline_mode<synchronous>, transform_indices = @transform_1, window_bounds = array<i64: 2, 33>}, {pipeline_mode = #tpu.pipeline_mode<synchronous>, transform_indices = @transform_2, window_bounds = array<i64: 2, 1>}, {transform_indices = @transform_3, window_bounds = array<i64: 2, 8>}]} {
    %c0 = arith.constant 0 : index
    %c0_0 = arith.constant 0 : index
    %0 = vector.load %arg2[%c0, %c0_0] : memref<2x33xf32, #tpu.memory_space<vmem>>, vector<2x33xf32>
    %c0_1 = arith.constant 0 : index
    %c0_2 = arith.constant 0 : index
    %1 = vector.load %arg1[%c0_1, %c0_2] : memref<8x33xf32, #tpu.memory_space<vmem>>, vector<8x33xf32>
    %cst = arith.constant dense<0.000000e+00> : vector<2x8xf32>
    %2 = tpu.matmul %0, %1, %cst {dimension_numbers = #tpu.dot_dimension_numbers<[1], [1], [0], [0], [0, 0, 1, 0], [], []>} : vector<2x33xf32>, vector<8x33xf32>, vector<2x8xf32> -> vector<2x8xf32>
    %c0_3 = arith.constant 0 : index
    %c0_4 = arith.constant 0 : index
    %3 = vector.load %arg3[%c0_3, %c0_4] : memref<2x1xf32, #tpu.memory_space<vmem>>, vector<2x1xf32>
    %4 = vector.broadcast %3 : vector<2x1xf32> to vector<2x8xf32>
    %5 = arith.addf %2, %4 : vector<2x8xf32>
    %c0_5 = arith.constant 0 : index
    %c0_6 = arith.constant 0 : index
    %6 = vector.load %arg4[%c0_5, %c0_6] : memref<2x8xf32, #tpu.memory_space<vmem>>, vector<2x8xf32>
    tpu.vector_store %arg4[%c0_5, %c0_6], %5 {strides = array<i32>} : memref<2x8xf32, #tpu.memory_space<vmem>>, vector<2x8xf32>,
    return
  }
  func.func @transform_0(%arg0: i32) -> (i32, i32) {
    %c0_i32 = arith.constant 0 : i32
    %c0_i32_0 = arith.constant 0 : i32
    return %arg0, %c0_i32 : i32, i32
  }
  func.func @transform_1(%arg0: i32) -> (i32, i32) {
    %c0_i32 = arith.constant 0 : i32
    %c0_i32_0 = arith.constant 0 : i32
    %c0_i32_1 = arith.constant 0 : i32
    return %c0_i32, %c0_i32_0 : i32, i32
  }
  func.func @transform_2(%arg0: i32) -> (i32, i32) {
    %c0_i32 = arith.constant 0 : i32
    %c0_i32_0 = arith.constant 0 : i32
    %c0_i32_1 = arith.constant 0 : i32
    return %c0_i32, %c0_i32_0 : i32, i32
  }
  func.func @transform_3(%arg0: i32) -> (i32, i32) {
    %c0_i32 = arith.constant 0 : i32
    %c0_i32_0 = arith.constant 0 : i32
    return %c0_i32, %arg0 : i32, i32
  }
}

</mosaic_0001>

<bundles_post_ra>
// kernel: tpu_custom_call.1
= control target key start
LH: loop header
LB: loop body
LE: loop exit
PB: predicated region body
PF: predicated region fallthrough
CT: control target
= control target key end

     0   :  { %8 = vsyncpa [#allocation3], 0  ;;  %s176_s0 = inlined_call_operand.hbm [shape: f32[8,33], index: 0, kind: input, shape index: {}]   ;;  %s177_s1 = inlined_call_operand.vmem [shape: f32[2,33], index: 1, kind: input, shape index: {}]   ;;  %s178_s2 = inlined_call_operand.vmem [shape: f32[2,1], index: 2, kind: input, shape index: {}]   ;;  %s179_s3 = inlined_call_operand.hbm [shape: f32[2,8], index: 3, kind: output, shape index: {}]  }
   0x1   :  { %9 = vsyncpa [#allocation4], 0  ;;  %s15_s14 = sshll.u32 %s176_s0, 4  ;;  %s141_s15 = smov [#allocation2]   ;;  %s16_s14 = int_to_ptr.hbm [resolvable:$true] %s15_s14 }
   0x2   :  { %s17_s16 = sshll.u32 %s141_s15, 4  ;;  %s18_s16 = int_to_ptr.vmem [resolvable:$true] %s17_s16 }
   0x3   :  { %20 = dma.hbm_to_vmem [thread:$0]  %s16_s14, 128, %s18_s16, [#allocation3]  }
   0x4   :  { %137 = dma.done.wait [#allocation3], 128  }
   0x5   :  { %138 = vsyncadd [#allocation3], 4294967168  ;;  %v142_v0 = vmov 0   ;;  %vm37_vm0 = vcmask 269312   ;;  %v30_v1 = vld [vmem:[#allocation2] sm:$0xff]  ;;  %s143_s0 = smov [#allocation5]  }
   0x6   :  { %88 = vset.pattern.permute.xlu0 %v142_v0  ;;  %v31_v2 = vld [vmem:[%s178_s2] sm:$0x3]  ;;  %83 = vmatpush.xpose.msk.msra.mxu0 %vm37_vm0, %v30_v1  ;;  %s71_s21 = sshll.u32 %s143_s0, 4  ;;  %s73_s24 = sshll.u32 %s179_s3, 4  ;;  %vm64_vm1 = vcmask 58368   ;;  %s72_s21 = int_to_ptr.vmem [resolvable:$true] %s71_s21  ;;  %s74_s24 = int_to_ptr.hbm [resolvable:$true] %s73_s24 }
   0x7   :  { %v29_v3 = vld [vmem:[%s177_s1] sm:$0x3]  ;;  %34 = vperm.xlu0 %88, %v31_v2  }
   0x9   :  { %84 = vmatmul.msk.f32.vlgmr.msra.gmra.mxu0 %vm37_vm0, %v29_v3 }
  0x79   :  { %v35_v4 = vpop.permute.xlu0 %34 }
  0x86   :  { %v61_v5 = vpop.f32.mrf.mxu0 }
  0x87   :  { %v62_v6 = vadd.f32 %v61_v5, %v35_v4 }
  0x89   :  { %65 = vst.msk [vmem:[#allocation5] sm:$0x3] %vm64_vm1, %v62_v6 }
  0x8a   :  { %76 = dma.vmem_to_hbm [thread:$0]  %s72_s21, 32, %s74_s24, [#allocation4]  }
  0x8b   :  { %139 = dma.done.wait [#allocation4], 32  }
  0x8c   :  { %140 = vsyncadd [#allocation4], 4294967264 }
  0x8d   :  { %81 = vsyncpa [#allocation3], 1 }
  0x8e   :  { %82 = vsyncpa [#allocation4], 1 }

</bundles_post_ra>
